<compile_context>
chip_gen: v7x
topology: tpu7x:2x2x1
jax: 0.10.0
libtpu: 0.0.40
codegen_flags: <defaults>
</compile_context>

<pallas_src>
import numpy as np
import jax
import jax.numpy as jnp
from jax.experimental import pallas as pl
from jax.experimental.pallas import tpu as pltpu


# --------------------------------------------------------------------------
# Stage 1: per-vocab stats from the natural [V, D] layout (D on the lane axis).
#   tvals[:, 0] = <table[v], w>       tvals[:, 1] = ||table[v]||^2
# --------------------------------------------------------------------------
def table_stats_kernel(table_ref, w_ref, tvals_ref):
    t = table_ref[...]                                            # [Vt, D] f32
    w = w_ref[...]                                                # [1,  D] f32
    tvals_ref[:, 0:1] = jnp.sum(t * w, axis=1, keepdims=True)     # [Vt, 1]
    tvals_ref[:, 1:2] = jnp.sum(t * t, axis=1, keepdims=True)     # [Vt, 1]


# --------------------------------------------------------------------------
# Stage 2: batched score kernel.  Batch lives on the lane axis:
#   tproj_ref / tsim_ref : [L, TB]    lens_ref : [1, TB]    prob_ref : [1, TB]
# --------------------------------------------------------------------------
def wac_sattr_kernel(tproj_ref, tsim_ref, lens_ref, b_ref, prob_ref):
    tproj = tproj_ref[...]                                        # [L, TB]
    tsim = tsim_ref[...]                                          # [L, TB]
    lens = lens_ref[...]                                          # [1, TB]

    # Length mask (positions run along the sublane axis).
    pos = jax.lax.broadcasted_iota(jnp.float32, tproj.shape, 0)   # [L, TB]
    valid = pos < lens                                            # [L, TB] bool
    mask = valid.astype(jnp.float32)

    # Exact reciprocal for the masked mean (tiny: TB scalars).
    inv_lens = 1.0 / lens                                         # [1, TB]

    # Attention weights with masked max-subtraction (exact algebra; padded
    # slots become exp(-inf) = 0 so they can never poison the row sum).
    masked_sim = jnp.where(valid, tsim, -jnp.inf)                 # [L, TB]
    m = jnp.max(masked_sim, axis=0, keepdims=True)                # [1, TB]
    expsim = jnp.exp(masked_sim - m)                              # [L, TB]
    inv_z = pl.reciprocal(jnp.sum(expsim, axis=0, keepdims=True),
                          approx=True)                            # [1, TB]

    # score[b] = sum_l (mask/lens + att)[l,b] * tproj[l,b] + bias
    combined = mask * inv_lens + expsim * inv_z                   # [L, TB]
    score = jnp.sum(combined * tproj, axis=0, keepdims=True) + b_ref[0, 0]
    prob_ref[...] = jax.nn.sigmoid(score)                         # [1, TB] lane-dense


# --------------------------------------------------------------------------
# Wrapper
# --------------------------------------------------------------------------
def wac_sattr_forward(X, lens, embed_table, w, b, *,
                      batch_tile=512, vocab_tile=1024):
    """X: [B, L] int token ids; lens: [B] int; returns prob [B, 1] f32."""
    B, L = X.shape
    V, D = embed_table.shape

    table_f32 = embed_table.astype(jnp.float32)                   # [V, D] natural layout
    w_row = w.astype(jnp.float32).reshape(1, D)                   # [1, D]
    b_sc = b.astype(jnp.float32).reshape(1, 1)                    # [1, 1] -> SMEM

    # ---- Stage 1: per-vocab stats, gridded over vocab tiles (fits v7x VMEM).
    Vt = V if V <= vocab_tile else vocab_tile
    tvals = pl.pallas_call(
        table_stats_kernel,
        out_shape=jax.ShapeDtypeStruct((V, 2), jnp.float32),
        grid=(pl.cdiv(V, Vt),),
        in_specs=[
            pl.BlockSpec((Vt, D), lambda i: (i, 0)),              # table tile
            pl.BlockSpec((1, D), lambda i: (0, 0)),               # w (resident)
        ],
        out_specs=pl.BlockSpec((Vt, 2), lambda i: (i, 0)),
        compiler_params=pltpu.CompilerParams(
            dimension_semantics=("parallel",)),
    )(table_f32, w_row)

    # ---- Per-token gather of the two scalars: O(B*L) data movement only.
    #      (jnp.take clamps out-of-range ids, matching the pure-JAX reference.)
    x_t = X.astype(jnp.int32).T                                   # [L, B]
    tproj_t = jnp.take(tvals[:, 0], x_t, axis=0)                  # [L, B] f32
    tsim_t = jnp.take(tvals[:, 1], x_t, axis=0)                   # [L, B] f32
    lens_row = lens.astype(jnp.float32).reshape(1, B)             # [1, B]

    # ---- Stage 2: batch on the lane axis, grid over batch tiles.
    TB = B if B <= batch_tile else batch_tile                     # 512 = multiple of 128
    grid = (pl.cdiv(B, TB),)
    prob_row = pl.pallas_call(
        wac_sattr_kernel,
        out_shape=jax.ShapeDtypeStruct((1, B), jnp.float32),
        grid=grid,
        in_specs=[
            pl.BlockSpec((L, TB), lambda i: (0, i)),              # tproj tile
            pl.BlockSpec((L, TB), lambda i: (0, i)),              # tsim tile
            pl.BlockSpec((1, TB), lambda i: (0, i)),              # lens tile
            pl.BlockSpec(memory_space=pltpu.MemorySpace.SMEM),    # bias scalar
        ],
        out_specs=pl.BlockSpec((1, TB), lambda i: (0, i)),        # lane-dense store
        compiler_params=pltpu.CompilerParams(
            dimension_semantics=("parallel",)),
    )(tproj_t, tsim_t, lens_row, b_sc)

    return prob_row.reshape(B, 1)


# --------------------------------------------------------------------------
# Pure-JAX reference matching the PyTorch forward exactly.
# --------------------------------------------------------------------------
def wac_sattr_reference(X, lens, embed_table, w, b):
    embeds = jnp.take(embed_table, X, axis=0).astype(jnp.float32)  # [B, L, D]
    B, L, D = embeds.shape
    lens_f = lens.astype(jnp.float32)
    mask = (jnp.arange(L, dtype=jnp.float32)[None, :]
            < lens_f[:, None]).astype(jnp.float32)
    embeds_ave0 = jnp.mean(mask[:, :, None] * embeds, axis=1)
    embeds_ave0 = embeds_ave0 * (jnp.float32(L) / lens_f)[:, None]
    sim = jnp.sum(embeds * embeds, axis=2)
    sim = jnp.exp(sim) * mask
    att = sim / jnp.sum(sim, axis=1, keepdims=True)
    embeds_ave = jnp.sum(att[:, :, None] * embeds, axis=1)
    score = (embeds_ave0 + embeds_ave) @ w.reshape(1, D).T + b.reshape(1, 1)
    return jax.nn.sigmoid(score)


if __name__ == "__main__":
    B, L = 16, 8          # batch, maxlen
    D = 32                # embedding_dim
    V = 16                # vocab_size

    key = jax.random.PRNGKey(0)
    k_emb, k_w, k_b, k_x, k_len = jax.random.split(key, 5)

    # nn.Embedding weight: 0.2 * (rand(V, D) - 0.5)
    embed_table = 0.2 * (jax.random.uniform(k_emb, (V, D), jnp.float32) - 0.5)

    # nn.Linear(D, 1): weight [1, D], bias [1], uniform(-1/sqrt(D), 1/sqrt(D))
    bound = 1.0 / np.sqrt(D)
    w = jax.random.uniform(k_w, (1, D), jnp.float32, -bound, bound)
    b = jax.random.uniform(k_b, (1,), jnp.float32, -bound, bound)

    # Inputs
    X = jax.random.randint(k_x, (B, L), 0, V, dtype=jnp.int32)
    lens = jax.random.randint(k_len, (B,), 1, L + 1, dtype=jnp.int32)

    prob = wac_sattr_forward(X, lens, embed_table, w, b)
    prob = jax.block_until_ready(prob)

    ref = wac_sattr_reference(X, lens, embed_table, w, b)
    # Tolerance covers the single remaining EUP approximate reciprocal
    # (1/sum(exp)); 1/lens is now exact and all other rewrites are exact algebra.
    np.testing.assert_allclose(np.asarray(prob), np.asarray(ref),
                               rtol=2e-3, atol=2e-3)

    print("KERNEL_OK")
</pallas_src>

<mosaic_0001>
module attributes {stable_mosaic.version = 11 : i64} {
  func.func @table_stats_kernel(%arg0: i32, %arg1: memref<16x32xf32, #tpu.memory_space<vmem>>, %arg2: memref<1x32xf32, #tpu.memory_space<vmem>>, %arg3: memref<16x2xf32, #tpu.memory_space<vmem>>) attributes {dimension_semantics = [#tpu.dimension_semantics<parallel>], iteration_bounds = array<i64: 1>, scalar_prefetch = 0 : i64, scratch_operands = 0 : i64, tpu.core_type = #tpu.core_type<tc>, window_params = [{transform_indices = @transform_0, window_bounds = array<i64: 16, 32>}, {pipeline_mode = #tpu.pipeline_mode<synchronous>, transform_indices = @transform_1, window_bounds = array<i64: 1, 32>}, {transform_indices = @transform_2, window_bounds = array<i64: 16, 2>}]} {
    %c0 = arith.constant 0 : index
    %c0_0 = arith.constant 0 : index
    %0 = vector.load %arg1[%c0, %c0_0] : memref<16x32xf32, #tpu.memory_space<vmem>>, vector<16x32xf32>
    %c0_1 = arith.constant 0 : index
    %c0_2 = arith.constant 0 : index
    %1 = vector.load %arg2[%c0_1, %c0_2] : memref<1x32xf32, #tpu.memory_space<vmem>>, vector<1x32xf32>
    %2 = vector.broadcast %1 : vector<1x32xf32> to vector<16x32xf32>
    %3 = arith.mulf %0, %2 : vector<16x32xf32>
    %cst = arith.constant dense<0.000000e+00> : vector<16xf32>
    %4 = vector.multi_reduction <add>, %3, %cst [1] : vector<16x32xf32> to vector<16xf32>
    %5 = vector.shape_cast %4 : vector<16xf32> to vector<16x1xf32>
    %c0_3 = arith.constant 0 : index
    %c0_4 = arith.constant 0 : index
    %6 = vector.load %arg3[%c0_3, %c0_4] : memref<16x2xf32, #tpu.memory_space<vmem>>, vector<16x1xf32>
    tpu.vector_store %arg3[%c0_3, %c0_4], %5 {strides = array<i32>} : memref<16x2xf32, #tpu.memory_space<vmem>>, vector<16x1xf32>,
    %7 = arith.mulf %0, %0 : vector<16x32xf32>
    %cst_5 = arith.constant dense<0.000000e+00> : vector<16xf32>
    %8 = vector.multi_reduction <add>, %7, %cst_5 [1] : vector<16x32xf32> to vector<16xf32>
    %9 = vector.shape_cast %8 : vector<16xf32> to vector<16x1xf32>
    %c0_6 = arith.constant 0 : index
    %c1 = arith.constant 1 : index
    %10 = vector.load %arg3[%c0_6, %c1] : memref<16x2xf32, #tpu.memory_space<vmem>>, vector<16x1xf32>
    tpu.vector_store %arg3[%c0_6, %c1], %9 {strides = array<i32>} : memref<16x2xf32, #tpu.memory_space<vmem>>, vector<16x1xf32>,
    return
  }
  func.func @transform_0(%arg0: i32) -> (i32, i32) {
    %c0_i32 = arith.constant 0 : i32
    %c0_i32_0 = arith.constant 0 : i32
    return %arg0, %c0_i32 : i32, i32
  }
  func.func @transform_1(%arg0: i32) -> (i32, i32) {
    %c0_i32 = arith.constant 0 : i32
    %c0_i32_0 = arith.constant 0 : i32
    %c0_i32_1 = arith.constant 0 : i32
    return %c0_i32, %c0_i32_0 : i32, i32
  }
  func.func @transform_2(%arg0: i32) -> (i32, i32) {
    %c0_i32 = arith.constant 0 : i32
    %c0_i32_0 = arith.constant 0 : i32
    return %arg0, %c0_i32 : i32, i32
  }
}

</mosaic_0001>

<bundles_post_ra>
// kernel: tpu_custom_call.1
= control target key start
LH: loop header
LB: loop body
LE: loop exit
PB: predicated region body
PF: predicated region fallthrough
CT: control target
= control target key end

     0   :  { %7 = vsyncpa [#allocation3], 0  ;;  %s90_s9 = smov [#allocation2]   ;;  %s135_s0 = inlined_call_operand.hbm [shape: f32[16,32], index: 0, kind: input, shape index: {}]   ;;  %s136_s1 = inlined_call_operand.vmem [shape: f32[1,32], index: 1, kind: input, shape index: {}]   ;;  %s137_s2 = inlined_call_operand.vmem [shape: f32[16,2], index: 2, kind: output, shape index: {}]  }
   0x1   :  { %s13_s10 = sshll.u32 %s90_s9, 4  ;;  %s66_s13 = scalar_lea.hbm %s135_s0, 256  ;;  %s14_s10 = int_to_ptr.vmem [resolvable:$true] %s13_s10 }
   0x2   :  { %p67_p0 = scmp.ne.s32.totalorder %s135_s0, %s66_s13  ;;  %p70_p1 = scmp.lt.u32.totalorder %s66_s13, %s135_s0 }
   0x4   :  { %p72_p2 = pnand %p70_p1, %p67_p0 }
   0x6   :  { %75 = shalt.err (!%p72_p2)
}
   0x7   :  { %s76_s18 = scalar_lea.vmem %s14_s10, 256  ;;  %p81_p4 = scmp.lt.s32.totalorder %s14_s10, %s14_s10 }
   0x8   :  { %p77_p3 = scmp.ne.s32.totalorder %s14_s10, %s76_s18  ;;  %p82_p5 = scmp.lt.s32.totalorder %s76_s18, %s76_s18 }
   0xa   :  { %p83_p6 = por %p82_p5, %p81_p4 }
   0xc   :  { %p84_p7 = pnand %p83_p6, %p77_p3 }
   0xe   :  { %87 = shalt.err (!%p84_p7)
}
   0xf   :  { %s91_s19 = smov 128   ;;  %s92_s20 = smov 8  }
  0x10   :  { %19 = dma.hbm_to_vmem [thread:$0]  %s135_s0, 256, %s14_s10, [#allocation3], %s91_s19, %s91_s19, %s92_s20  }
  0x11   :  { %88 = dma.done.wait [#allocation3], 256  }
  0x12   :  { %89 = vsyncadd [#allocation3], 4294967040  ;;  %v25_v0 = vld [vmem:[#allocation2] sm:$0xff]  ;;  %vm36_vm0 = vcmask 261120   ;;  %v26_v2 = vld [vmem:[#allocation2 + $0x8] sm:$0xff]  ;;  %vm43_vm1 = vcmask 7168  }
  0x13   :  { %v62_v1 = vld [vmem:[%s136_s1] ss:$0 sm:$0xff]  ;;  %v46_v4 = vmul.f32 %v25_v0, %v25_v0  ;;  %v47_v6 = vmul.f32 %v26_v2, %v26_v2  ;;  %vm54_vm2 = vcmask 15368  }
  0x14   :  { %v34_v3 = vmul.f32 %v62_v1, %v25_v0  ;;  %v35_v5 = vmul.f32 %v62_v1, %v26_v2 }
  0x15   :  { %v48_v8 = vsel %vm36_vm0, %v46_v4, 0.0  ;;  %v51_v10 = vsel %vm36_vm0, %v47_v6, 0.0 }
  0x16   :  { %v37_v7 = vsel %vm36_vm0, %v34_v3, 0.0  ;;  %49 = vadd.xlane.f32.xlu1 %v48_v8  ;;  %v40_v9 = vsel %vm36_vm0, %v35_v5, 0.0 }
  0x17   :  { %38 = vadd.xlane.f32.xlu0 %v37_v7 }
  0x1a   :  { %52 = vadd.xlane.f32.xlu1 %v51_v10 }
  0x1b   :  { %41 = vadd.xlane.f32.xlu0 %v40_v9 }
  0xa3   :  { %v50_v12 = vpop.xlane.xlu1 %49 }
  0xa4   :  { %v39_v11 = vpop.xlane.xlu0 %38 }
  0xa5   :  { %44 = vst.msk [vmem:[%s137_s2] sm:$0xff] %vm43_vm1, %v39_v11 }
  0xa6   :  { %55 = vst.msk [vmem:[%s137_s2] sm:$0xff] %vm54_vm2, %v50_v12 }
  0xa7   :  { %v53_v14 = vpop.xlane.xlu1 %52 }
  0xa8   :  { %v42_v13 = vpop.xlane.xlu0 %41 }
  0xa9   :  { %45 = vst.msk [vmem:[%s137_s2 + $0x8] sm:$0xff] %vm43_vm1, %v42_v13 }
  0xaa   :  { %56 = vst.msk [vmem:[%s137_s2 + $0x8] sm:$0xff] %vm54_vm2, %v53_v14 }
  0xab   :  { %61 = vsyncpa [#allocation3], 1 }

</bundles_post_ra>
